<compile_context>
chip_gen: v6e
topology: v6e:2x2x1
jax: 0.10.0
libtpu: 0.0.40
codegen_flags: <defaults>
</compile_context>

<pallas_src>
import jax
import jax.numpy as jnp
from jax.experimental import pallas as pl
from jax.experimental.pallas import tpu as pltpu

_LANE = 128
_SUBLANE_MULT = 32               # covers f32(8) / bf16(16) / int8(32) sublane tiling
_SMALL_TOTAL_BYTES = 8 << 20     # fast path: all 3 operands single-buffered in VMEM
_VMEM_SLACK_BYTES = 4 << 20      # headroom for Mosaic internal scratch


def _add_kernel(x1_ref, x2_ref, o_ref):
    # Whole-tile elementwise add on the VPU.
    o_ref[...] = x1_ref[...] + x2_ref[...]


def _vmem_capacity_bytes() -> int:
    """Physical per-core VMEM (128 MiB on v5e/v6e, 64 MiB on v7x)."""
    try:
        return int(pltpu.get_tpu_info().vmem_capacity_bytes)
    except Exception:
        return 128 << 20  # conservative default if the query is unavailable


def _pick_block_bytes(vmem_cap: int) -> int:
    """Per-operand block target; footprint = 3 operands x 2 pipeline buffers."""
    # v7x (64 MiB VMEM, 3.2 TB/s HBM) -> 8 MiB blocks (~52 MiB footprint).
    # v5e/v6e (128 MiB VMEM)          -> 12 MiB blocks (~76 MiB footprint).
    target = (8 << 20) if vmem_cap <= (64 << 20) else (12 << 20)
    # Never let the double-buffered footprint exceed ~85% of physical VMEM.
    cap = (int(vmem_cap * 0.85) - _VMEM_SLACK_BYTES) // 6
    return max(min(target, cap), 1 << 20)


def _cost(n: int, itemsize: int) -> pl.CostEstimate:
    return pl.CostEstimate(flops=n, transcendentals=0, bytes_accessed=3 * n * itemsize)


def _alias_kwargs(alias_x1: bool):
    return {"input_output_aliases": {0: 0}} if alias_x1 else {}


def _add_small(a, b, *, alias_x1: bool, vmem_cap: int):
    """Single full-array block (no grid); works for any shape that fits VMEM."""
    n = a.size
    itemsize = jnp.dtype(a.dtype).itemsize
    total = 3 * n * itemsize
    # Explicit limit so v5e's 16 MiB default scoped VMEM is never the gate.
    limit = min(max(total + _VMEM_SLACK_BYTES, 16 << 20), int(vmem_cap * 0.85))
    return pl.pallas_call(
        _add_kernel,
        out_shape=jax.ShapeDtypeStruct(a.shape, a.dtype),
        compiler_params=pltpu.CompilerParams(vmem_limit_bytes=limit),
        cost_estimate=_cost(n, itemsize),
        **_alias_kwargs(alias_x1),
    )(a, b)


def _add_tiled_slab(a, b, *, alias_x1: bool, vmem_cap: int):
    """Tiled path over a lane-dense [rows, 128] slab."""
    rows, lane = a.shape
    n = a.size
    itemsize = jnp.dtype(a.dtype).itemsize

    block_bytes = _pick_block_bytes(vmem_cap)
    tile_rows = max(block_bytes // (lane * itemsize), _SUBLANE_MULT)
    if tile_rows >= rows:
        tile_rows = rows  # single full-dim block (always a legal block shape)
    else:
        tile_rows = (tile_rows // _SUBLANE_MULT) * _SUBLANE_MULT

    grid = (pl.cdiv(rows, tile_rows),)
    footprint = 3 * 2 * tile_rows * lane * itemsize
    limit = min(footprint + _VMEM_SLACK_BYTES, int(vmem_cap * 0.9))

    spec = pl.BlockSpec((tile_rows, lane), lambda i: (i, 0))
    return pl.pallas_call(
        _add_kernel,
        out_shape=jax.ShapeDtypeStruct((rows, lane), a.dtype),
        grid_spec=pltpu.PrefetchScalarGridSpec(
            num_scalar_prefetch=0,
            grid=grid,
            in_specs=[spec, spec],
            out_specs=spec,
        ),
        compiler_params=pltpu.CompilerParams(
            # TODO(synk): verify in xprof that v7x shards this axis across both
            # TensorCores; if not, add an explicit leading core axis (core_map /
            # CORE_PARALLEL) and consider pipeline_mode=pl.Buffered(3) on inputs.
            dimension_semantics=("parallel",),
            vmem_limit_bytes=limit,
        ),
        cost_estimate=_cost(n, itemsize),
        **_alias_kwargs(alias_x1),
    )(a, b)


def _add_tiled_nd(a, b, *, alias_x1: bool, vmem_cap: int):
    """Tiled path for lane-unaligned N-D arrays: full last-two-dims blocks,
    tile over the (collapsed) leading axis. No padding needed."""
    L, d1, d2 = a.shape
    n = a.size
    itemsize = jnp.dtype(a.dtype).itemsize
    slab_bytes = d1 * d2 * itemsize

    block_bytes = _pick_block_bytes(vmem_cap)
    tile_l = min(max(block_bytes // slab_bytes, 1), L)

    grid = (pl.cdiv(L, tile_l),)
    footprint = 3 * 2 * tile_l * slab_bytes
    limit = min(footprint + _VMEM_SLACK_BYTES, int(vmem_cap * 0.9))

    spec = pl.BlockSpec((tile_l, d1, d2), lambda i: (i, 0, 0))
    return pl.pallas_call(
        _add_kernel,
        out_shape=jax.ShapeDtypeStruct((L, d1, d2), a.dtype),
        grid_spec=pltpu.PrefetchScalarGridSpec(
            num_scalar_prefetch=0,
            grid=grid,
            in_specs=[spec, spec],
            out_specs=spec,
        ),
        compiler_params=pltpu.CompilerParams(
            dimension_semantics=("parallel",),
            vmem_limit_bytes=limit,
        ),
        cost_estimate=_cost(n, itemsize),
        **_alias_kwargs(alias_x1),
    )(a, b)


def plus_fusion(x1, x2, *, donate_x1: bool = False):
    """Elementwise x1 + x2 implemented as a Pallas TPU kernel.

    Set donate_x1=True only if the caller donates x1 at the jit boundary;
    otherwise XLA would insert a defensive copy for the alias.
    """
    assert x1.shape == x2.shape and x1.dtype == x2.dtype
    orig_shape = x1.shape
    n = x1.size
    itemsize = jnp.dtype(x1.dtype).itemsize
    vmem_cap = _vmem_capacity_bytes()
    total_bytes = 3 * n * itemsize

    if n == 0:
        return x1 + x2  # degenerate empty input

    # ---- Lane-aligned: view as [rows, 128] slab (free reshape, contiguous). ----
    if n % _LANE == 0:
        a = x1.reshape(n // _LANE, _LANE)
        b = x2.reshape(n // _LANE, _LANE)
        if total_bytes <= _SMALL_TOTAL_BYTES:
            out = _add_small(a, b, alias_x1=donate_x1, vmem_cap=vmem_cap)
        else:
            out = _add_tiled_slab(a, b, alias_x1=donate_x1, vmem_cap=vmem_cap)
        return out.reshape(orig_shape)

    # ---- Lane-unaligned: avoid jnp.pad / slice HBM round trips. ----
    if total_bytes <= _SMALL_TOTAL_BYTES:
        # Whole arrays fit in VMEM -> single full-array block in original shape.
        a = x1 if x1.ndim >= 2 else x1.reshape(1, n)
        b = x2 if x2.ndim >= 2 else x2.reshape(1, n)
        out = _add_small(a, b, alias_x1=donate_x1, vmem_cap=vmem_cap)
        return out.reshape(orig_shape)

    if x1.ndim >= 2:
        d1, d2 = orig_shape[-2], orig_shape[-1]
        L = n // (d1 * d2)
        slab_bytes = d1 * d2 * itemsize
        if 6 * slab_bytes + _VMEM_SLACK_BYTES <= int(vmem_cap * 0.85):
            a = x1.reshape(L, d1, d2)
            b = x2.reshape(L, d1, d2)
            out = _add_tiled_nd(a, b, alias_x1=donate_x1, vmem_cap=vmem_cap)
            return out.reshape(orig_shape)

    # TODO(synk): rare huge lane-unaligned fallback (e.g. a very large 1-D input)
    # still pays one pad/slice HBM round trip; could be replaced by an aligned-
    # prefix kernel + XLA tail written via dynamic_update_slice if it matters.
    n_pad = pl.cdiv(n, _LANE) * _LANE
    a = jnp.pad(x1.reshape(-1), (0, n_pad - n)).reshape(n_pad // _LANE, _LANE)
    b = jnp.pad(x2.reshape(-1), (0, n_pad - n)).reshape(n_pad // _LANE, _LANE)
    out = _add_tiled_slab(a, b, alias_x1=False, vmem_cap=vmem_cap)
    return out.reshape(-1)[:n].reshape(orig_shape)


if __name__ == "__main__":
    key = jax.random.PRNGKey(0)
    k1, k2, k3, k4, k5, k6 = jax.random.split(key, 6)

    # NCHW inputs consistent with a conv-feature fusion module (fast path).
    x1 = jax.random.normal(k1, (2, 4, 16, 16), dtype=jnp.float32)
    x2 = jax.random.normal(k2, (2, 4, 16, 16), dtype=jnp.float32)
    out = plus_fusion(x1, x2)
    jax.block_until_ready(out)
    ref = x1 + x2
    assert out.shape == ref.shape and out.dtype == ref.dtype
    assert jnp.allclose(out, ref)

    # Lane-unaligned small input (single full-array block, no padding).
    z1 = jax.random.normal(k3, (2, 3, 7, 5), dtype=jnp.float32)
    z2 = jax.random.normal(k4, (2, 3, 7, 5), dtype=jnp.float32)
    out_odd = plus_fusion(z1, z2)
    jax.block_until_ready(out_odd)
    assert jnp.allclose(out_odd, z1 + z2)

    # Medium input to exercise the tiled slab path (still modest: 4 MiB / array).
    y1 = jax.random.normal(k5, (8, 16, 64, 128), dtype=jnp.float32)
    y2 = jax.random.normal(k6, (8, 16, 64, 128), dtype=jnp.float32)
    out_big = plus_fusion(y1, y2)
    jax.block_until_ready(out_big)
    assert jnp.allclose(out_big, y1 + y2)

    print("KERNEL_OK")
</pallas_src>

<mosaic_0001>
module attributes {stable_mosaic.version = 11 : i64} {
  func.func @_add_kernel(%arg0: memref<16x128xf32, #tpu.memory_space<vmem>>, %arg1: memref<16x128xf32, #tpu.memory_space<vmem>>, %arg2: memref<16x128xf32, #tpu.memory_space<vmem>>) attributes {dimension_semantics = [], scalar_prefetch = 0 : i64, scratch_operands = 0 : i64, tpu.core_type = #tpu.core_type<tc>} {
    %c0 = arith.constant 0 : index
    %c0_0 = arith.constant 0 : index
    %0 = vector.load %arg0[%c0, %c0_0] : memref<16x128xf32, #tpu.memory_space<vmem>>, vector<16x128xf32>
    %c0_1 = arith.constant 0 : index
    %c0_2 = arith.constant 0 : index
    %1 = vector.load %arg1[%c0_1, %c0_2] : memref<16x128xf32, #tpu.memory_space<vmem>>, vector<16x128xf32>
    %2 = arith.addf %0, %1 : vector<16x128xf32>
    %c0_3 = arith.constant 0 : index
    %c0_4 = arith.constant 0 : index
    %3 = vector.load %arg2[%c0_3, %c0_4] : memref<16x128xf32, #tpu.memory_space<vmem>>, vector<16x128xf32>
    tpu.vector_store %arg2[%c0_3, %c0_4], %2 {strides = array<i32>} : memref<16x128xf32, #tpu.memory_space<vmem>>, vector<16x128xf32>,
    return
  }
}

</mosaic_0001>

<bundles_post_ra>
// kernel: tpu_custom_call.1
= control target key start
LH: loop header
LB: loop body
LE: loop exit
PB: predicated region body
PF: predicated region fallthrough
CT: control target
= control target key end

     0   :  { %7 = vsyncpa [#allocation3], 0  ;;  %s175_s0 = inlined_call_operand.hbm [shape: f32[16,128], index: 0, kind: input, shape index: {}]   ;;  %s176_s1 = inlined_call_operand.hbm [shape: f32[16,128], index: 1, kind: input, shape index: {}]   ;;  %s177_s2 = inlined_call_operand.hbm [shape: f32[16,128], index: 2, kind: output, shape index: {}]  }
   0x1   :  { %8 = vsyncpa [#allocation6], 0 }
   0x2   :  { %9 = vsyncpa [#allocation4], 0  ;;  %s137_s9 = smov [#allocation2]  }
   0x3   :  { %s15_s10 = sshll.u32 %s137_s9, 4  ;;  %s16_s10 = int_to_ptr.vmem [resolvable:$true] %s15_s10 }
   0x4   :  { %s79_s11 = scalar_lea.vmem %s16_s10, 256  ;;  %p84_p1 = scmp.lt.s32.totalorder %s16_s10, %s16_s10 }
   0x5   :  { %p80_p0 = scmp.ne.s32.totalorder %s16_s10, %s79_s11  ;;  %p85_p2 = scmp.lt.s32.totalorder %s79_s11, %s79_s11 }
   0x7   :  { %p86_p3 = por %p85_p2, %p84_p1 }
   0x9   :  { %p87_p4 = pnand %p86_p3, %p80_p0 }
   0xb   :  { %90 = shalt.err (!%p87_p4)
}
   0xc   :  { %s138_s12 = smov 128   ;;  %s139_s13 = smov 8  }
   0xd   :  { %21 = dma.hbm_to_vmem [thread:$0]  %s175_s0, 256, %s16_s10, [#allocation3], %s138_s12, %s138_s12, %s139_s13  }
   0xe   :  { %s140_s16 = smov [#allocation5]  }
   0xf   :  { %s27_s17 = sshll.u32 %s140_s16, 4  ;;  %s28_s17 = int_to_ptr.vmem [resolvable:$true] %s27_s17 }
  0x10   :  { %s99_s18 = scalar_lea.vmem %s28_s17, 256  ;;  %p104_p6 = scmp.lt.s32.totalorder %s28_s17, %s28_s17 }
  0x11   :  { %p100_p5 = scmp.ne.s32.totalorder %s28_s17, %s99_s18  ;;  %p105_p7 = scmp.lt.s32.totalorder %s99_s18, %s99_s18 }
  0x13   :  { %p106_p8 = por %p105_p7, %p104_p6 }
  0x15   :  { %p107_p9 = pnand %p106_p8, %p100_p5 }
  0x17   :  { %110 = shalt.err (!%p107_p9)
}
  0x18   :  { %33 = dma.hbm_to_vmem [thread:$0]  %s176_s1, 256, %s28_s17, [#allocation6], %s138_s12, %s138_s12, %s139_s13  }
  0x19   :  { %131 = dma.done.wait [#allocation3], 256  }
  0x1a   :  { %132 = vsyncadd [#allocation3], 4294967040 }
  0x1b   :  { %133 = dma.done.wait [#allocation6], 256  }
  0x1c   :  { %134 = vsyncadd [#allocation6], 4294967040  ;;  %s141_s0 = smov [#allocation7]   ;;  %v40_v0 = vld [vmem:[#allocation2] sm:$0xff]  ;;  %v42_v1 = vld [vmem:[#allocation5] sm:$0xff] }
  0x1d   :  { %s53_s21 = sshll.u32 %s141_s0, 4  ;;  %v41_v2 = vld [vmem:[#allocation2 + $0x8] sm:$0xff]  ;;  %v44_v3 = vadd.f32 %v42_v1, %v40_v0  ;;  %v43_v4 = vld [vmem:[#allocation5 + $0x8] sm:$0xff]  ;;  %s54_s21 = int_to_ptr.vmem [resolvable:$true] %s53_s21 }
  0x1e   :  { %v45_v5 = vadd.f32 %v43_v4, %v41_v2  ;;  %s111_s22 = scalar_lea.vmem %s54_s21, 256  ;;  %p116_p11 = scmp.lt.s32.totalorder %s54_s21, %s54_s21 }
  0x1f   :  { %46 = vst [vmem:[#allocation7] sm:$0xff] %v44_v3  ;;  %p112_p10 = scmp.ne.s32.totalorder %s54_s21, %s111_s22  ;;  %p117_p12 = scmp.lt.s32.totalorder %s111_s22, %s111_s22 }
  0x20   :  { %47 = vst [vmem:[#allocation7 + $0x8] sm:$0xff] %v45_v5 }
  0x21   :  { %p118_p13 = por %p117_p12, %p116_p11 }
  0x23   :  { %p119_p0 = pnand %p118_p13, %p112_p10 }
  0x25   :  { %122 = shalt.err (!%p119_p0)
}
  0x26   :  { %59 = dma.vmem_to_hbm [thread:$0]  %s54_s21, 256, %s177_s2, [#allocation4], %s138_s12, %s138_s12, %s139_s13  }
  0x27   :  { %135 = dma.done.wait [#allocation4], 256  }
  0x28   :  { %136 = vsyncadd [#allocation4], 4294967040 }
  0x29   :  { %63 = vsyncpa [#allocation3], 1 }
  0x2a   :  { %64 = vsyncpa [#allocation6], 1 }
  0x2b   :  { %65 = vsyncpa [#allocation4], 1 }

</bundles_post_ra>
